<compile_context>
chip_gen: v7x
topology: tpu7x:2x2x1
jax: 0.10.0
libtpu: 0.0.40
codegen_flags: <defaults>
</compile_context>

<pallas_src>
from functools import partial

import jax
import jax.numpy as jnp
from jax import lax
from jax.experimental import pallas as pl
from jax.experimental.pallas import tpu as pltpu


# -----------------------------------------------------------------------------
# Kernel 1: grouped qkv projection -> head-split q / k / v  (scale folded into q)
# grid = (B, N // n_block), both axes "parallel"
# -----------------------------------------------------------------------------
def _grouped_qkv_kernel(*refs, num_groups, num_heads, scale, has_bias):
    if has_bias:
        x_ref, w_ref, b_ref = refs[0], refs[1], refs[2]
        q_ref, k_ref, v_ref = refs[3], refs[4], refs[5]
    else:
        x_ref, w_ref = refs[0], refs[1]
        b_ref = None
        q_ref, k_ref, v_ref = refs[2], refs[3], refs[4]

    G, H = num_groups, num_heads
    C = x_ref.shape[2]
    cg = C // G            # input channels per group
    D = C // H             # head dim
    out_dt = q_ref.dtype

    x = x_ref[0]           # (tn, C)

    # Per-group lane-dense matmuls, f32 accumulation on the MXU.
    pieces = []
    for g in range(G):
        y = jnp.dot(x[:, g * cg:(g + 1) * cg], w_ref[g],
                    preferred_element_type=jnp.float32)        # (tn, 3C/G)
        if has_bias:
            y = y + b_ref[g].astype(jnp.float32)               # (1, 3C/G) broadcast
        pieces.append(y)
    qkv = jnp.concatenate(pieces, axis=-1)                     # (tn, 3C), group-contiguous

    # Column layout matches the PyTorch qkv.reshape(B, N, 3, H, D):
    #   q head h -> cols [h*D, (h+1)*D), k -> C + ..., v -> 2C + ...
    for h in range(H):
        q_ref[0, h] = (qkv[:, h * D:(h + 1) * D] * scale).astype(out_dt)
        k_ref[0, h] = qkv[:, C + h * D:C + (h + 1) * D].astype(out_dt)
        v_ref[0, h] = qkv[:, 2 * C + h * D:2 * C + (h + 1) * D].astype(out_dt)


# -----------------------------------------------------------------------------
# Kernel 2: flash attention (online softmax over kv tiles) + grouped output proj
# grid = (B, N // q_block, N // kv_block), ("parallel", "parallel", "arbitrary")
# -----------------------------------------------------------------------------
def _flash_attn_proj_kernel(*refs, num_groups, num_heads, has_proj_bias):
    if has_proj_bias:
        q_ref, k_ref, v_ref, pw_ref, pb_ref = refs[:5]
        o_ref, m_scr, l_scr, acc_scr = refs[5:]
    else:
        q_ref, k_ref, v_ref, pw_ref = refs[:4]
        pb_ref = None
        o_ref, m_scr, l_scr, acc_scr = refs[4:]

    G, H = num_groups, num_heads
    C = o_ref.shape[2]
    cg = C // G
    dt = v_ref.dtype
    ki = pl.program_id(2)

    @pl.when(ki == 0)
    def _init():
        m_scr[...] = jnp.full(m_scr.shape, -jnp.inf, dtype=m_scr.dtype)
        l_scr[...] = jnp.zeros(l_scr.shape, dtype=l_scr.dtype)
        acc_scr[...] = jnp.zeros(acc_scr.shape, dtype=acc_scr.dtype)

    # One online-softmax update per head for this kv tile. Real loop (not a Python
    # unroll) keeps vreg pressure flat; all indexing is on the leading head axis.
    @pl.loop(0, H)
    def _head(h):
        q = q_ref[0, h]                                        # (tq, D), pre-scaled
        k = k_ref[0, h]                                        # (tk, D)
        v = v_ref[0, h]                                        # (tk, D)
        s = lax.dot_general(q, k, (((1,), (1,)), ((), ())),
                            preferred_element_type=jnp.float32)  # (tq, tk)
        m_prev = m_scr[h]                                      # (tq, 1)
        m_new = jnp.maximum(m_prev, jnp.max(s, axis=-1, keepdims=True))
        alpha = jnp.exp(m_prev - m_new)
        p = jnp.exp(s - m_new)
        l_scr[h] = alpha * l_scr[h] + jnp.sum(p, axis=-1, keepdims=True)
        acc_scr[h] = alpha * acc_scr[h] + jnp.dot(p.astype(dt), v,
                                                  preferred_element_type=jnp.float32)
        m_scr[h] = m_new

    @pl.when(ki == pl.num_programs(2) - 1)
    def _finalize():
        # Normalize each head (EUP reciprocal + 1 Newton step) and assemble (tq, C).
        heads = []
        for h in range(H):
            l = l_scr[h]
            inv = pl.reciprocal(l, approx=True)
            inv = inv * (2.0 - l * inv)
            heads.append((acc_scr[h] * inv).astype(dt))
        attn_out = jnp.concatenate(heads, axis=-1)             # (tq, C)

        # Grouped output projection: per-group lane-dense matmuls.
        outs = []
        for g in range(G):
            outs.append(jnp.dot(attn_out[:, g * cg:(g + 1) * cg], pw_ref[g],
                                preferred_element_type=jnp.float32))
        out = jnp.concatenate(outs, axis=-1)                   # (tq, C) f32
        if has_proj_bias:
            out = out + pb_ref[...].astype(jnp.float32)        # (1, C) broadcast
        o_ref[0] = out.astype(o_ref.dtype)


# -----------------------------------------------------------------------------
# Wrapper
# -----------------------------------------------------------------------------
def grouped_attention_forward(x, params, num_heads, num_groups, *,
                              qkv_bias=False, proj_bias=True,
                              n_block=None, q_block=None, kv_block=None,
                              compute_dtype=None,
                              vmem_limit_bytes=48 * 1024 * 1024):
    """x: (B, N, C). params: grouped weights as in the PyTorch module:
       qkv_w (G, C/G, 3C/G), qkv_b (G, 3C/G), proj_w (G, C/G, C/G), proj_b (G, C/G).
       compute_dtype: pass jnp.bfloat16 on v6e/v7x (f32 accumulation is kept)."""
    B, N, C = x.shape
    H, G = num_heads, num_groups
    assert C % H == 0 and C % G == 0 and (3 * C) % G == 0
    D = C // H
    scale = D ** (-0.5)

    n_block = min(N, 128) if n_block is None else n_block
    q_block = min(N, 128) if q_block is None else q_block
    kv_block = min(N, 128) if kv_block is None else kv_block
    assert N % n_block == 0 and N % q_block == 0 and N % kv_block == 0

    out_dtype = x.dtype
    dt = compute_dtype if compute_dtype is not None else x.dtype
    x = x.astype(dt)
    qkv_w = params["qkv_w"].astype(dt)
    proj_w = params["proj_w"].astype(dt)
    # Biases stay f32 (tiny; added onto f32 accumulators in-kernel).
    proj_b = params["proj_b"].reshape(1, C).astype(jnp.float32) if proj_bias else None
    qkv_b = (params["qkv_b"].reshape(G, 1, 3 * C // G).astype(jnp.float32)
             if qkv_bias else None)

    # ---- kernel 1: grouped qkv projection + head split -------------------------
    qkv_in_specs = [
        pl.BlockSpec((1, n_block, C), lambda b, n: (b, n, 0)),
        pl.BlockSpec((G, C // G, 3 * C // G), lambda b, n: (0, 0, 0)),
    ]
    qkv_args = [x, qkv_w]
    if qkv_bias:
        qkv_in_specs.append(pl.BlockSpec((G, 1, 3 * C // G), lambda b, n: (0, 0, 0)))
        qkv_args.append(qkv_b)

    head_spec = pl.BlockSpec((1, H, n_block, D), lambda b, n: (b, 0, n, 0))
    q, k, v = pl.pallas_call(
        partial(_grouped_qkv_kernel, num_groups=G, num_heads=H,
                scale=scale, has_bias=qkv_bias),
        grid=(B, N // n_block),
        in_specs=qkv_in_specs,
        out_shape=[jax.ShapeDtypeStruct((B, H, N, D), dt)] * 3,
        out_specs=[head_spec] * 3,
        compiler_params=pltpu.CompilerParams(
            dimension_semantics=("parallel", "parallel"),
            vmem_limit_bytes=vmem_limit_bytes),
    )(*qkv_args)

    # ---- kernel 2: flash attention + grouped output projection -----------------
    attn_in_specs = [
        pl.BlockSpec((1, H, q_block, D), lambda b, qi, ki: (b, 0, qi, 0)),
        pl.BlockSpec((1, H, kv_block, D), lambda b, qi, ki: (b, 0, ki, 0)),
        pl.BlockSpec((1, H, kv_block, D), lambda b, qi, ki: (b, 0, ki, 0)),
        pl.BlockSpec((G, C // G, C // G), lambda b, qi, ki: (0, 0, 0)),
    ]
    attn_args = [q, k, v, proj_w]
    if proj_bias:
        attn_in_specs.append(pl.BlockSpec((1, C), lambda b, qi, ki: (0, 0)))
        attn_args.append(proj_b)

    out = pl.pallas_call(
        partial(_flash_attn_proj_kernel, num_groups=G, num_heads=H,
                has_proj_bias=proj_bias),
        grid=(B, N // q_block, N // kv_block),
        in_specs=attn_in_specs,
        out_shape=jax.ShapeDtypeStruct((B, N, C), out_dtype),
        out_specs=pl.BlockSpec((1, q_block, C), lambda b, qi, ki: (b, qi, 0)),
        scratch_shapes=[
            pltpu.VMEM((H, q_block, 1), jnp.float32),   # running max m
            pltpu.VMEM((H, q_block, 1), jnp.float32),   # running sum l
            pltpu.VMEM((H, q_block, D), jnp.float32),   # running PV accumulator
        ],
        compiler_params=pltpu.CompilerParams(
            dimension_semantics=("parallel", "parallel", "arbitrary"),
            vmem_limit_bytes=vmem_limit_bytes),
    )(*attn_args)
    return out


# -----------------------------------------------------------------------------
# Pure-JAX reference for correctness checking
# -----------------------------------------------------------------------------
def _ref_grouped_linear(x, w, b):
    B, N, Cin = x.shape
    G, cg, og = w.shape
    xg = x.reshape(B, N, G, cg)
    y = jnp.einsum("bngc,gco->bngo", xg, w) + b[None, None]
    return y.reshape(B, N, G * og)


def _ref_forward(x, params, num_heads):
    B, N, C = x.shape
    H = num_heads
    D = C // H
    scale = D ** (-0.5)
    qkv = _ref_grouped_linear(x, params["qkv_w"], params["qkv_b"])
    qkv = qkv.reshape(B, N, 3, H, D).transpose(2, 0, 3, 1, 4)
    q, k, v = qkv[0] * scale, qkv[1], qkv[2]
    attn = jnp.einsum("bhnd,bhmd->bhnm", q, k)
    attn = jax.nn.softmax(attn, axis=-1)
    out = jnp.einsum("bhnm,bhmd->bhnd", attn, v)
    out = out.transpose(0, 2, 1, 3).reshape(B, N, C)
    return _ref_grouped_linear(out, params["proj_w"], params["proj_b"])


if __name__ == "__main__":
    # Small shapes consistent with the module (dim divisible by num_heads / num_groups).
    B, N, C = 2, 16, 64
    num_heads = 8
    num_groups = 8
    cin_g = C // num_groups

    key = jax.random.PRNGKey(0)
    kx, kw1, kw2, kb2 = jax.random.split(key, 4)

    x = jax.random.normal(kx, (B, N, C), dtype=jnp.float32)

    params = {
        # qkv: GroupedLinear(C -> 3C, groups=G), qkv_bias=False -> zero bias (unused)
        "qkv_w": jax.random.normal(kw1, (num_groups, cin_g, 3 * C // num_groups),
                                   dtype=jnp.float32) * 0.05,
        "qkv_b": jnp.zeros((num_groups, 3 * C // num_groups), dtype=jnp.float32),
        # proj: GroupedLinear(C -> C, groups=G), proj_bias=True
        "proj_w": jax.random.normal(kw2, (num_groups, cin_g, C // num_groups),
                                    dtype=jnp.float32) * 0.05,
        "proj_b": jax.random.normal(kb2, (num_groups, C // num_groups),
                                    dtype=jnp.float32) * 0.05,
    }

    # Small token/qkv tiles so the demo actually exercises the multi-tile flash path
    # (N=16 -> 2 q-tiles x 2 kv-tiles). attn_drop / proj_drop default to 0.0 -> identity.
    out = grouped_attention_forward(
        x, params, num_heads, num_groups,
        qkv_bias=False, proj_bias=True,
        n_block=8, q_block=8, kv_block=8)
    out = jax.block_until_ready(out)

    ref = jax.block_until_ready(_ref_forward(x, params, num_heads))
    assert out.shape == (B, N, C), out.shape
    max_diff = float(jnp.max(jnp.abs(out - ref)))
    assert jnp.allclose(out, ref, atol=1e-4, rtol=1e-4), max_diff

    print("KERNEL_OK")
</pallas_src>

<mosaic_0001>
module attributes {stable_mosaic.version = 11 : i64} {
  func.func @_grouped_qkv_kernel(%arg0: i32, %arg1: i32, %arg2: memref<1x8x64xf32, #tpu.memory_space<vmem>>, %arg3: memref<8x8x24xf32, #tpu.memory_space<vmem>>, %arg4: memref<1x8x8x8xf32, #tpu.memory_space<vmem>>, %arg5: memref<1x8x8x8xf32, #tpu.memory_space<vmem>>, %arg6: memref<1x8x8x8xf32, #tpu.memory_space<vmem>>) attributes {dimension_semantics = [#tpu.dimension_semantics<parallel>, #tpu.dimension_semantics<parallel>], iteration_bounds = array<i64: 2, 2>, scalar_prefetch = 0 : i64, scratch_operands = 0 : i64, tpu.core_type = #tpu.core_type<tc>, window_params = [{transform_indices = @transform_0, window_bounds = array<i64: 1, 8, 64>}, {pipeline_mode = #tpu.pipeline_mode<synchronous>, transform_indices = @transform_1, window_bounds = array<i64: 8, 8, 24>}, {transform_indices = @transform_2, window_bounds = array<i64: 1, 8, 8, 8>}, {transform_indices = @transform_3, window_bounds = array<i64: 1, 8, 8, 8>}, {transform_indices = @transform_4, window_bounds = array<i64: 1, 8, 8, 8>}]} {
    %c0 = arith.constant 0 : index
    %c0_0 = arith.constant 0 : index
    %c0_1 = arith.constant 0 : index
    %0 = vector.load %arg2[%c0, %c0_0, %c0_1] : memref<1x8x64xf32, #tpu.memory_space<vmem>>, vector<1x8x64xf32>
    %1 = vector.shape_cast %0 : vector<1x8x64xf32> to vector<8x64xf32>
    %2 = vector.extract_strided_slice %1 {offsets = [0, 0], sizes = [8, 8], strides = [1, 1]} : vector<8x64xf32> to vector<8x8xf32>
    %c0_2 = arith.constant 0 : index
    %c0_3 = arith.constant 0 : index
    %c0_4 = arith.constant 0 : index
    %3 = vector.load %arg3[%c0_2, %c0_3, %c0_4] : memref<8x8x24xf32, #tpu.memory_space<vmem>>, vector<1x8x24xf32>
    %4 = vector.shape_cast %3 : vector<1x8x24xf32> to vector<8x24xf32>
    %cst = arith.constant dense<0.000000e+00> : vector<8x24xf32>
    %5 = tpu.matmul %2, %4, %cst {dimension_numbers = #tpu.dot_dimension_numbers<[1], [0], [0], [1], [0, 0, 1, 1], [], []>} : vector<8x8xf32>, vector<8x24xf32>, vector<8x24xf32> -> vector<8x24xf32>
    %6 = vector.extract_strided_slice %1 {offsets = [0, 8], sizes = [8, 8], strides = [1, 1]} : vector<8x64xf32> to vector<8x8xf32>
    %c1 = arith.constant 1 : index
    %c0_5 = arith.constant 0 : index
    %c0_6 = arith.constant 0 : index
    %7 = vector.load %arg3[%c1, %c0_5, %c0_6] : memref<8x8x24xf32, #tpu.memory_space<vmem>>, vector<1x8x24xf32>
    %8 = vector.shape_cast %7 : vector<1x8x24xf32> to vector<8x24xf32>
    %cst_7 = arith.constant dense<0.000000e+00> : vector<8x24xf32>
    %9 = tpu.matmul %6, %8, %cst_7 {dimension_numbers = #tpu.dot_dimension_numbers<[1], [0], [0], [1], [0, 0, 1, 1], [], []>} : vector<8x8xf32>, vector<8x24xf32>, vector<8x24xf32> -> vector<8x24xf32>
    %10 = vector.extract_strided_slice %1 {offsets = [0, 16], sizes = [8, 8], strides = [1, 1]} : vector<8x64xf32> to vector<8x8xf32>
    %c2 = arith.constant 2 : index
    %c0_8 = arith.constant 0 : index
    %c0_9 = arith.constant 0 : index
    %11 = vector.load %arg3[%c2, %c0_8, %c0_9] : memref<8x8x24xf32, #tpu.memory_space<vmem>>, vector<1x8x24xf32>
    %12 = vector.shape_cast %11 : vector<1x8x24xf32> to vector<8x24xf32>
    %cst_10 = arith.constant dense<0.000000e+00> : vector<8x24xf32>
    %13 = tpu.matmul %10, %12, %cst_10 {dimension_numbers = #tpu.dot_dimension_numbers<[1], [0], [0], [1], [0, 0, 1, 1], [], []>} : vector<8x8xf32>, vector<8x24xf32>, vector<8x24xf32> -> vector<8x24xf32>
    %14 = vector.extract_strided_slice %1 {offsets = [0, 24], sizes = [8, 8], strides = [1, 1]} : vector<8x64xf32> to vector<8x8xf32>
    %c3 = arith.constant 3 : index
    %c0_11 = arith.constant 0 : index
    %c0_12 = arith.constant 0 : index
    %15 = vector.load %arg3[%c3, %c0_11, %c0_12] : memref<8x8x24xf32, #tpu.memory_space<vmem>>, vector<1x8x24xf32>
    %16 = vector.shape_cast %15 : vector<1x8x24xf32> to vector<8x24xf32>
    %cst_13 = arith.constant dense<0.000000e+00> : vector<8x24xf32>
    %17 = tpu.matmul %14, %16, %cst_13 {dimension_numbers = #tpu.dot_dimension_numbers<[1], [0], [0], [1], [0, 0, 1, 1], [], []>} : vector<8x8xf32>, vector<8x24xf32>, vector<8x24xf32> -> vector<8x24xf32>
    %18 = vector.extract_strided_slice %1 {offsets = [0, 32], sizes = [8, 8], strides = [1, 1]} : vector<8x64xf32> to vector<8x8xf32>
    %c4 = arith.constant 4 : index
    %c0_14 = arith.constant 0 : index
    %c0_15 = arith.constant 0 : index
    %19 = vector.load %arg3[%c4, %c0_14, %c0_15] : memref<8x8x24xf32, #tpu.memory_space<vmem>>, vector<1x8x24xf32>
    %20 = vector.shape_cast %19 : vector<1x8x24xf32> to vector<8x24xf32>
    %cst_16 = arith.constant dense<0.000000e+00> : vector<8x24xf32>
    %21 = tpu.matmul %18, %20, %cst_16 {dimension_numbers = #tpu.dot_dimension_numbers<[1], [0], [0], [1], [0, 0, 1, 1], [], []>} : vector<8x8xf32>, vector<8x24xf32>, vector<8x24xf32> -> vector<8x24xf32>
    %22 = vector.extract_strided_slice %1 {offsets = [0, 40], sizes = [8, 8], strides = [1, 1]} : vector<8x64xf32> to vector<8x8xf32>
    %c5 = arith.constant 5 : index
    %c0_17 = arith.constant 0 : index
    %c0_18 = arith.constant 0 : index
    %23 = vector.load %arg3[%c5, %c0_17, %c0_18] : memref<8x8x24xf32, #tpu.memory_space<vmem>>, vector<1x8x24xf32>
    %24 = vector.shape_cast %23 : vector<1x8x24xf32> to vector<8x24xf32>
    %cst_19 = arith.constant dense<0.000000e+00> : vector<8x24xf32>
    %25 = tpu.matmul %22, %24, %cst_19 {dimension_numbers = #tpu.dot_dimension_numbers<[1], [0], [0], [1], [0, 0, 1, 1], [], []>} : vector<8x8xf32>, vector<8x24xf32>, vector<8x24xf32> -> vector<8x24xf32>
    %26 = vector.extract_strided_slice %1 {offsets = [0, 48], sizes = [8, 8], strides = [1, 1]} : vector<8x64xf32> to vector<8x8xf32>
    %c6 = arith.constant 6 : index
    %c0_20 = arith.constant 0 : index
    %c0_21 = arith.constant 0 : index
    %27 = vector.load %arg3[%c6, %c0_20, %c0_21] : memref<8x8x24xf32, #tpu.memory_space<vmem>>, vector<1x8x24xf32>
    %28 = vector.shape_cast %27 : vector<1x8x24xf32> to vector<8x24xf32>
    %cst_22 = arith.constant dense<0.000000e+00> : vector<8x24xf32>
    %29 = tpu.matmul %26, %28, %cst_22 {dimension_numbers = #tpu.dot_dimension_numbers<[1], [0], [0], [1], [0, 0, 1, 1], [], []>} : vector<8x8xf32>, vector<8x24xf32>, vector<8x24xf32> -> vector<8x24xf32>
    %30 = vector.extract_strided_slice %1 {offsets = [0, 56], sizes = [8, 8], strides = [1, 1]} : vector<8x64xf32> to vector<8x8xf32>
    %c7 = arith.constant 7 : index
    %c0_23 = arith.constant 0 : index
    %c0_24 = arith.constant 0 : index
    %31 = vector.load %arg3[%c7, %c0_23, %c0_24] : memref<8x8x24xf32, #tpu.memory_space<vmem>>, vector<1x8x24xf32>
    %32 = vector.shape_cast %31 : vector<1x8x24xf32> to vector<8x24xf32>
    %cst_25 = arith.constant dense<0.000000e+00> : vector<8x24xf32>
    %33 = tpu.matmul %30, %32, %cst_25 {dimension_numbers = #tpu.dot_dimension_numbers<[1], [0], [0], [1], [0, 0, 1, 1], [], []>} : vector<8x8xf32>, vector<8x24xf32>, vector<8x24xf32> -> vector<8x24xf32>
    %34 = tpu.concatenate %5, %9, %13, %17, %21, %25, %29, %33 in 1 : vector<8x24xf32>, vector<8x24xf32>, vector<8x24xf32>, vector<8x24xf32>, vector<8x24xf32>, vector<8x24xf32>, vector<8x24xf32>, vector<8x24xf32> -> vector<8x192xf32>
    %35 = vector.extract_strided_slice %34 {offsets = [0, 0], sizes = [8, 8], strides = [1, 1]} : vector<8x192xf32> to vector<8x8xf32>
    %cst_26 = arith.constant 0.353553385 : f32
    %36 = vector.broadcast %cst_26 : f32 to vector<8x8xf32>
    %37 = arith.mulf %35, %36 : vector<8x8xf32>
    %c0_27 = arith.constant 0 : index
    %c0_28 = arith.constant 0 : index
    %c0_29 = arith.constant 0 : index
    %c0_30 = arith.constant 0 : index
    %38 = vector.load %arg4[%c0_27, %c0_28, %c0_29, %c0_30] : memref<1x8x8x8xf32, #tpu.memory_space<vmem>>, vector<1x1x8x8xf32>
    %39 = vector.shape_cast %38 : vector<1x1x8x8xf32> to vector<8x8xf32>
    %40 = vector.shape_cast %37 : vector<8x8xf32> to vector<1x1x8x8xf32>
    tpu.vector_store %arg4[%c0_27, %c0_28, %c0_29, %c0_30], %40 {strides = array<i32>} : memref<1x8x8x8xf32, #tpu.memory_space<vmem>>, vector<1x1x8x8xf32>,
    %41 = vector.extract_strided_slice %34 {offsets = [0, 64], sizes = [8, 8], strides = [1, 1]} : vector<8x192xf32> to vector<8x8xf32>
    %c0_31 = arith.constant 0 : index
    %c0_32 = arith.constant 0 : index
    %c0_33 = arith.constant 0 : index
    %c0_34 = arith.constant 0 : index
    %42 = vector.load %arg5[%c0_31, %c0_32, %c0_33, %c0_34] : memref<1x8x8x8xf32, #tpu.memory_space<vmem>>, vector<1x1x8x8xf32>
    %43 = vector.shape_cast %42 : vector<1x1x8x8xf32> to vector<8x8xf32>
    %44 = vector.shape_cast %41 : vector<8x8xf32> to vector<1x1x8x8xf32>
    tpu.vector_store %arg5[%c0_31, %c0_32, %c0_33, %c0_34], %44 {strides = array<i32>} : memref<1x8x8x8xf32, #tpu.memory_space<vmem>>, vector<1x1x8x8xf32>,
    %45 = vector.extract_strided_slice %34 {offsets = [0, 128], sizes = [8, 8], strides = [1, 1]} : vector<8x192xf32> to vector<8x8xf32>
    %c0_35 = arith.constant 0 : index
    %c0_36 = arith.constant 0 : index
    %c0_37 = arith.constant 0 : index
    %c0_38 = arith.constant 0 : index
    %46 = vector.load %arg6[%c0_35, %c0_36, %c0_37, %c0_38] : memref<1x8x8x8xf32, #tpu.memory_space<vmem>>, vector<1x1x8x8xf32>
    %47 = vector.shape_cast %46 : vector<1x1x8x8xf32> to vector<8x8xf32>
    %48 = vector.shape_cast %45 : vector<8x8xf32> to vector<1x1x8x8xf32>
    tpu.vector_store %arg6[%c0_35, %c0_36, %c0_37, %c0_38], %48 {strides = array<i32>} : memref<1x8x8x8xf32, #tpu.memory_space<vmem>>, vector<1x1x8x8xf32>,
    %49 = vector.extract_strided_slice %34 {offsets = [0, 8], sizes = [8, 8], strides = [1, 1]} : vector<8x192xf32> to vector<8x8xf32>
    %cst_39 = arith.constant 0.353553385 : f32
    %50 = vector.broadcast %cst_39 : f32 to vector<8x8xf32>
    %51 = arith.mulf %49, %50 : vector<8x8xf32>
    %c0_40 = arith.constant 0 : index
    %c1_41 = arith.constant 1 : index
    %c0_42 = arith.constant 0 : index
    %c0_43 = arith.constant 0 : index
    %52 = vector.load %arg4[%c0_40, %c1_41, %c0_42, %c0_43] : memref<1x8x8x8xf32, #tpu.memory_space<vmem>>, vector<1x1x8x8xf32>
    %53 = vector.shape_cast %52 : vector<1x1x8x8xf32> to vector<8x8xf32>
    %54 = vector.shape_cast %51 : vector<8x8xf32> to vector<1x1x8x8xf32>
    tpu.vector_store %arg4[%c0_40, %c1_41, %c0_42, %c0_43], %54 {strides = array<i32>} : memref<1x8x8x8xf32, #tpu.memory_space<vmem>>, vector<1x1x8x8xf32>,
    %55 = vector.extract_strided_slice %34 {offsets = [0, 72], sizes = [8, 8], strides = [1, 1]} : vector<8x192xf32> to vector<8x8xf32>
    %c0_44 = arith.constant 0 : index
    %c1_45 = arith.constant 1 : index
    %c0_46 = arith.constant 0 : index
    %c0_47 = arith.constant 0 : index
    %56 = vector.load %arg5[%c0_44, %c1_45, %c0_46, %c0_47] : memref<1x8x8x8xf32, #tpu.memory_space<vmem>>, vector<1x1x8x8xf32>
    %57 = vector.shape_cast %56 : vector<1x1x8x8xf32> to vector<8x8xf32>
    %58 = vector.shape_cast %55 : vector<8x8xf32> to vector<1x1x8x8xf32>
    tpu.vector_store %arg5[%c0_44, %c1_45, %c0_46, %c0_47], %58 {strides = array<i32>} : memref<1x8x8x8xf32, #tpu.memory_space<vmem>>, vector<1x1x8x8xf32>,
    %59 = vector.extract_strided_slice %34 {offsets = [0, 136], sizes = [8, 8], strides = [1, 1]} : vector<8x192xf32> to vector<8x8xf32>
    %c0_48 = arith.constant 0 : index
    %c1_49 = arith.constant 1 : index
    %c0_50 = arith.constant 0 : index
    %c0_51 = arith.constant 0 : index
    %60 = vector.load %arg6[%c0_48, %c1_49, %c0_50, %c0_51] : memref<1x8x8x8xf32, #tpu.memory_space<vmem>>, vector<1x1x8x8xf32>
    %61 = vector.shape_cast %60 : vector<1x1x8x8xf32> to vector<8x8xf32>
    %62 = vector.shape_cast %59 : vector<8x8xf32> to vector<1x1x8x8xf32>
    tpu.vector_store %arg6[%c0_48, %c1_49, %c0_50, %c0_51], %62 {strides = array<i32>} : memref<1x8x8x8xf32, #tpu.memory_space<vmem>>, vector<1x1x8x8xf32>,
    %63 = vector.extract_strided_slice %34 {offsets = [0, 16], sizes = [8, 8], strides = [1, 1]} : vector<8x192xf32> to vector<8x8xf32>
    %cst_52 = arith.constant 0.353553385 : f32
    %64 = vector.broadcast %cst_52 : f32 to vector<8x8xf32>
    %65 = arith.mulf %63, %64 : vector<8x8xf32>
    %c0_53 = arith.constant 0 : index
    %c2_54 = arith.constant 2 : index
    %c0_55 = arith.constant 0 : index
    %c0_56 = arith.constant 0 : index
    %66 = vector.load %arg4[%c0_53, %c2_54, %c0_55, %c0_56] : memref<1x8x8x8xf32, #tpu.memory_space<vmem>>, vector<1x1x8x8xf32>
    %67 = vector.shape_cast %66 : vector<1x1x8x8xf32> to vector<8x8xf32>
    %68 = vector.shape_cast %65 : vector<8x8xf32> to vector<1x1x8x8xf32>
    tpu.vector_store %arg4[%c0_53, %c2_54, %c0_55, %c0_56], %68 {strides = array<i32>} : memref<1x8x8x8xf32, #tpu.memory_space<vmem>>, vector<1x1x8x8xf32>,
    %69 = vector.extract_strided_slice %34 {offsets = [0, 80], sizes = [8, 8], strides = [1, 1]} : vector<8x192xf32> to vector<8x8xf32>
    %c0_57 = arith.constant 0 : index
    %c2_58 = arith.constant 2 : index
    %c0_59 = arith.constant 0 : index
    %c0_60 = arith.constant 0 : index
    %70 = vector.load %arg5[%c0_57, %c2_58, %c0_59, %c0_60] : memref<1x8x8x8xf32, #tpu.memory_space<vmem>>, vector<1x1x8x8xf32>
    %71 = vector.shape_cast %70 : vector<1x1x8x8xf32> to vector<8x8xf32>
    %72 = vector.shape_cast %69 : vector<8x8xf32> to vector<1x1x8x8xf32>
    tpu.vector_store %arg5[%c0_57, %c2_58, %c0_59, %c0_60], %72 {strides = array<i32>} : memref<1x8x8x8xf32, #tpu.memory_space<vmem>>, vector<1x1x8x8xf32>,
    %73 = vector.extract_strided_slice %34 {offsets = [0, 144], sizes = [8, 8], strides = [1, 1]} : vector<8x192xf32> to vector<8x8xf32>
    %c0_61 = arith.constant 0 : index
    %c2_62 = arith.constant 2 : index
    %c0_63 = arith.constant 0 : index
    %c0_64 = arith.constant 0 : index
    %74 = vector.load %arg6[%c0_61, %c2_62, %c0_63, %c0_64] : memref<1x8x8x8xf32, #tpu.memory_space<vmem>>, vector<1x1x8x8xf32>
    %75 = vector.shape_cast %74 : vector<1x1x8x8xf32> to vector<8x8xf32>
    %76 = vector.shape_cast %73 : vector<8x8xf32> to vector<1x1x8x8xf32>
    tpu.vector_store %arg6[%c0_61, %c2_62, %c0_63, %c0_64], %76 {strides = array<i32>} : memref<1x8x8x8xf32, #tpu.memory_space<vmem>>, vector<1x1x8x8xf32>,
    %77 = vector.extract_strided_slice %34 {offsets = [0, 24], sizes = [8, 8], strides = [1, 1]} : vector<8x192xf32> to vector<8x8xf32>
    %cst_65 = arith.constant 0.353553385 : f32
    %78 = vector.broadcast %cst_65 : f32 to vector<8x8xf32>
    %79 = arith.mulf %77, %78 : vector<8x8xf32>
    %c0_66 = arith.constant 0 : index
    %c3_67 = arith.constant 3 : index
    %c0_68 = arith.constant 0 : index
    %c0_69 = arith.constant 0 : index
    %80 = vector.load %arg4[%c0_66, %c3_67, %c0_68, %c0_69] : memref<1x8x8x8xf32, #tpu.memory_space<vmem>>, vector<1x1x8x8xf32>
    %81 = vector.shape_cast %80 : vector<1x1x8x8xf32> to vector<8x8xf32>
    %82 = vector.shape_cast %79 : vector<8x8xf32> to vector<1x1x8x8xf32>
    tpu.vector_store %arg4[%c0_66, %c3_67, %c0_68, %c0_69], %82 {strides = array<i32>} : memref<1x8x8x8xf32, #tpu.memory_space<vmem>>, vector<1x1x8x8xf32>,
    %83 = vector.extract_strided_slice %34 {offsets = [0, 88], sizes = [8, 8], strides = [1, 1]} : vector<8x192xf32> to vector<8x8xf32>
    %c0_70 = arith.constant 0 : index
    %c3_71 = arith.constant 3 : index
    %c0_72 = arith.constant 0 : index
    %c0_73 = arith.constant 0 : index
    %84 = vector.load %arg5[%c0_70, %c3_71, %c0_72, %c0_73] : memref<1x8x8x8xf32, #tpu.memory_space<vmem>>, vector<1x1x8x8xf32>
    %85 = vector.shape_cast %84 : vector<1x1x8x8xf32> to vector<8x8xf32>
    %86 = vector.shape_cast %83 : vector<8x8xf32> to vector<1x1x8x8xf32>
    tpu.vector_store %arg5[%c0_70, %c3_71, %c0_72, %c0_73], %86 {strides = array<i32>} : memref<1x8x8x8xf32, #tpu.memory_space<vmem>>, vector<1x1x8x8xf32>,
    %87 = vector.extract_strided_slice %34 {offsets = [0, 152], sizes = [8, 8], strides = [1, 1]} : vector<8x192xf32> to vector<8x8xf32>
    %c0_74 = arith.constant 0 : index
    %c3_75 = arith.constant 3 : index
    %c0_76 = arith.constant 0 : index
    %c0_77 = arith.constant 0 : index
    %88 = vector.load %arg6[%c0_74, %c3_75, %c0_76, %c0_77] : memref<1x8x8x8xf32, #tpu.memory_space<vmem>>, vector<1x1x8x8xf32>
    %89 = vector.shape_cast %88 : vector<1x1x8x8xf32> to vector<8x8xf32>
    %90 = vector.shape_cast %87 : vector<8x8xf32> to vector<1x1x8x8xf32>
    tpu.vector_store %arg6[%c0_74, %c3_75, %c0_76, %c0_77], %90 {strides = array<i32>} : memref<1x8x8x8xf32, #tpu.memory_space<vmem>>, vector<1x1x8x8xf32>,
    %91 = vector.extract_strided_slice %34 {offsets = [0, 32], sizes = [8, 8], strides = [1, 1]} : vector<8x192xf32> to vector<8x8xf32>
    %cst_78 = arith.constant 0.353553385 : f32
    %92 = vector.broadcast %cst_78 : f32 to vector<8x8xf32>
    %93 = arith.mulf %91, %92 : vector<8x8xf32>
    %c0_79 = arith.constant 0 : index
    %c4_80 = arith.constant 4 : index
    %c0_81 = arith.constant 0 : index
    %c0_82 = arith.constant 0 : index
    %94 = vector.load %arg4[%c0_79, %c4_80, %c0_81, %c0_82] : memref<1x8x8x8xf32, #tpu.memory_space<vmem>>, vector<1x1x8x8xf32>
    %95 = vector.shape_cast %94 : vector<1x1x8x8xf32> to vector<8x8xf32>
    %96 = vector.shape_cast %93 : vector<8x8xf32> to vector<1x1x8x8xf32>
    tpu.vector_store %arg4[%c0_79, %c4_80, %c0_81, %c0_82], %96 {strides = array<i32>} : memref<1x8x8x8xf32, #tpu.memory_space<vmem>>, vector<1x1x8x8xf32>,
    %97 = vector.extract_strided_slice %34 {offsets = [0, 96], sizes = [8, 8], strides = [1, 1]} : vector<8x192xf32> to vector<8x8xf32>
    %c0_83 = arith.constant 0 : index
    %c4_84 = arith.constant 4 : index
    %c0_85 = arith.constant 0 : index
    %c0_86 = arith.constant 0 : index
    %98 = vector.load %arg5[%c0_83, %c4_84, %c0_85, %c0_86] : memref<1x8x8x8xf32, #tpu.memory_space<vmem>>, vector<1x1x8x8xf32>
    %99 = vector.shape_cast %98 : vector<1x1x8x8xf32> to vector<8x8xf32>
    %100 = vector.shape_cast %97 : vector<8x8xf32> to vector<1x1x8x8xf32>
    tpu.vector_store %arg5[%c0_83, %c4_84, %c0_85, %c0_86], %100 {strides = array<i32>} : memref<1x8x8x8xf32, #tpu.memory_space<vmem>>, vector<1x1x8x8xf32>,
    %101 = vector.extract_strided_slice %34 {offsets = [0, 160], sizes = [8, 8], strides = [1, 1]} : vector<8x192xf32> to vector<8x8xf32>
    %c0_87 = arith.constant 0 : index
    %c4_88 = arith.constant 4 : index
    %c0_89 = arith.constant 0 : index
    %c0_90 = arith.constant 0 : index
    %102 = vector.load %arg6[%c0_87, %c4_88, %c0_89, %c0_90] : memref<1x8x8x8xf32, #tpu.memory_space<vmem>>, vector<1x1x8x8xf32>
    %103 = vector.shape_cast %102 : vector<1x1x8x8xf32> to vector<8x8xf32>
    %104 = vector.shape_cast %101 : vector<8x8xf32> to vector<1x1x8x8xf32>
    tpu.vector_store %arg6[%c0_87, %c4_88, %c0_89, %c0_90], %104 {strides = array<i32>} : memref<1x8x8x8xf32, #tpu.memory_space<vmem>>, vector<1x1x8x8xf32>,
    %105 = vector.extract_strided_slice %34 {offsets = [0, 40], sizes = [8, 8], strides = [1, 1]} : vector<8x192xf32> to vector<8x8xf32>
    %cst_91 = arith.constant 0.353553385 : f32
    %106 = vector.broadcast %cst_91 : f32 to vector<8x8xf32>
    %107 = arith.mulf %105, %106 : vector<8x8xf32>
    %c0_92 = arith.constant 0 : index
    %c5_93 = arith.constant 5 : index
    %c0_94 = arith.constant 0 : index
    %c0_95 = arith.constant 0 : index
    %108 = vector.load %arg4[%c0_92, %c5_93, %c0_94, %c0_95] : memref<1x8x8x8xf32, #tpu.memory_space<vmem>>, vector<1x1x8x8xf32>
    %109 = vector.shape_cast %108 : vector<1x1x8x8xf32> to vector<8x8xf32>
    %110 = vector.shape_cast %107 : vector<8x8xf32> to vector<1x1x8x8xf32>
    tpu.vector_store %arg4[%c0_92, %c5_93, %c0_94, %c0_95], %110 {strides = array<i32>} : memref<1x8x8x8xf32, #tpu.memory_space<vmem>>, vector<1x1x8x8xf32>,
    %111 = vector.extract_strided_slice %34 {offsets = [0, 104], sizes = [8, 8], strides = [1, 1]} : vector<8x192xf32> to vector<8x8xf32>
    %c0_96 = arith.constant 0 : index
    %c5_97 = arith.constant 5 : index
    %c0_98 = arith.constant 0 : index
    %c0_99 = arith.constant 0 : index
    %112 = vector.load %arg5[%c0_96, %c5_97, %c0_98, %c0_99] : memref<1x8x8x8xf32, #tpu.memory_space<vmem>>, vector<1x1x8x8xf32>
    %113 = vector.shape_cast %112 : vector<1x1x8x8xf32> to vector<8x8xf32>
    %114 = vector.shape_cast %111 : vector<8x8xf32> to vector<1x1x8x8xf32>
    tpu.vector_store %arg5[%c0_96, %c5_97, %c0_98, %c0_99], %114 {strides = array<i32>} : memref<1x8x8x8xf32, #tpu.memory_space<vmem>>, vector<1x1x8x8xf32>,
    %115 = vector.extract_strided_slice %34 {offsets = [0, 168], sizes = [8, 8], strides = [1, 1]} : vector<8x192xf32> to vector<8x8xf32>
    %c0_100 = arith.constant 0 : index
    %c5_101 = arith.constant 5 : index
    %c0_102 = arith.constant 0 : index
    %c0_103 = arith.constant 0 : index
    %116 = vector.load %arg6[%c0_100, %c5_101, %c0_102, %c0_103] : memref<1x8x8x8xf32, #tpu.memory_space<vmem>>, vector<1x1x8x8xf32>
    %117 = vector.shape_cast %116 : vector<1x1x8x8xf32> to vector<8x8xf32>
    %118 = vector.shape_cast %115 : vector<8x8xf32> to vector<1x1x8x8xf32>
    tpu.vector_store %arg6[%c0_100, %c5_101, %c0_102, %c0_103], %118 {strides = array<i32>} : memref<1x8x8x8xf32, #tpu.memory_space<vmem>>, vector<1x1x8x8xf32>,
    %119 = vector.extract_strided_slice %34 {offsets = [0, 48], sizes = [8, 8], strides = [1, 1]} : vector<8x192xf32> to vector<8x8xf32>
    %cst_104 = arith.constant 0.353553385 : f32
    %120 = vector.broadcast %cst_104 : f32 to vector<8x8xf32>
    %121 = arith.mulf %119, %120 : vector<8x8xf32>
    %c0_105 = arith.constant 0 : index
    %c6_106 = arith.constant 6 : index
    %c0_107 = arith.constant 0 : index
    %c0_108 = arith.constant 0 : index
    %122 = vector.load %arg4[%c0_105, %c6_106, %c0_107, %c0_108] : memref<1x8x8x8xf32, #tpu.memory_space<vmem>>, vector<1x1x8x8xf32>
    %123 = vector.shape_cast %122 : vector<1x1x8x8xf32> to vector<8x8xf32>
    %124 = vector.shape_cast %121 : vector<8x8xf32> to vector<1x1x8x8xf32>
    tpu.vector_store %arg4[%c0_105, %c6_106, %c0_107, %c0_108], %124 {strides = array<i32>} : memref<1x8x8x8xf32, #tpu.memory_space<vmem>>, vector<1x1x8x8xf32>,
    %125 = vector.extract_strided_slice %34 {offsets = [0, 112], sizes = [8, 8], strides = [1, 1]} : vector<8x192xf32> to vector<8x8xf32>
    %c0_109 = arith.constant 0 : index
    %c6_110 = arith.constant 6 : index
    %c0_111 = arith.constant 0 : index
    %c0_112 = arith.constant 0 : index
    %126 = vector.load %arg5[%c0_109, %c6_110, %c0_111, %c0_112] : memref<1x8x8x8xf32, #tpu.memory_space<vmem>>, vector<1x1x8x8xf32>
    %127 = vector.shape_cast %126 : vector<1x1x8x8xf32> to vector<8x8xf32>
    %128 = vector.shape_cast %125 : vector<8x8xf32> to vector<1x1x8x8xf32>
    tpu.vector_store %arg5[%c0_109, %c6_110, %c0_111, %c0_112], %128 {strides = array<i32>} : memref<1x8x8x8xf32, #tpu.memory_space<vmem>>, vector<1x1x8x8xf32>,
    %129 = vector.extract_strided_slice %34 {offsets = [0, 176], sizes = [8, 8], strides = [1, 1]} : vector<8x192xf32> to vector<8x8xf32>
    %c0_113 = arith.constant 0 : index
    %c6_114 = arith.constant 6 : index
    %c0_115 = arith.constant 0 : index
    %c0_116 = arith.constant 0 : index
    %130 = vector.load %arg6[%c0_113, %c6_114, %c0_115, %c0_116] : memref<1x8x8x8xf32, #tpu.memory_space<vmem>>, vector<1x1x8x8xf32>
    %131 = vector.shape_cast %130 : vector<1x1x8x8xf32> to vector<8x8xf32>
    %132 = vector.shape_cast %129 : vector<8x8xf32> to vector<1x1x8x8xf32>
    tpu.vector_store %arg6[%c0_113, %c6_114, %c0_115, %c0_116], %132 {strides = array<i32>} : memref<1x8x8x8xf32, #tpu.memory_space<vmem>>, vector<1x1x8x8xf32>,
    %133 = vector.extract_strided_slice %34 {offsets = [0, 56], sizes = [8, 8], strides = [1, 1]} : vector<8x192xf32> to vector<8x8xf32>
    %cst_117 = arith.constant 0.353553385 : f32
    %134 = vector.broadcast %cst_117 : f32 to vector<8x8xf32>
    %135 = arith.mulf %133, %134 : vector<8x8xf32>
    %c0_118 = arith.constant 0 : index
    %c7_119 = arith.constant 7 : index
    %c0_120 = arith.constant 0 : index
    %c0_121 = arith.constant 0 : index
    %136 = vector.load %arg4[%c0_118, %c7_119, %c0_120, %c0_121] : memref<1x8x8x8xf32, #tpu.memory_space<vmem>>, vector<1x1x8x8xf32>
    %137 = vector.shape_cast %136 : vector<1x1x8x8xf32> to vector<8x8xf32>
    %138 = vector.shape_cast %135 : vector<8x8xf32> to vector<1x1x8x8xf32>
    tpu.vector_store %arg4[%c0_118, %c7_119, %c0_120, %c0_121], %138 {strides = array<i32>} : memref<1x8x8x8xf32, #tpu.memory_space<vmem>>, vector<1x1x8x8xf32>,
    %139 = vector.extract_strided_slice %34 {offsets = [0, 120], sizes = [8, 8], strides = [1, 1]} : vector<8x192xf32> to vector<8x8xf32>
    %c0_122 = arith.constant 0 : index
    %c7_123 = arith.constant 7 : index
    %c0_124 = arith.constant 0 : index
    %c0_125 = arith.constant 0 : index
    %140 = vector.load %arg5[%c0_122, %c7_123, %c0_124, %c0_125] : memref<1x8x8x8xf32, #tpu.memory_space<vmem>>, vector<1x1x8x8xf32>
    %141 = vector.shape_cast %140 : vector<1x1x8x8xf32> to vector<8x8xf32>
    %142 = vector.shape_cast %139 : vector<8x8xf32> to vector<1x1x8x8xf32>
    tpu.vector_store %arg5[%c0_122, %c7_123, %c0_124, %c0_125], %142 {strides = array<i32>} : memref<1x8x8x8xf32, #tpu.memory_space<vmem>>, vector<1x1x8x8xf32>,
    %143 = vector.extract_strided_slice %34 {offsets = [0, 184], sizes = [8, 8], strides = [1, 1]} : vector<8x192xf32> to vector<8x8xf32>
    %c0_126 = arith.constant 0 : index
    %c7_127 = arith.constant 7 : index
    %c0_128 = arith.constant 0 : index
    %c0_129 = arith.constant 0 : index
    %144 = vector.load %arg6[%c0_126, %c7_127, %c0_128, %c0_129] : memref<1x8x8x8xf32, #tpu.memory_space<vmem>>, vector<1x1x8x8xf32>
    %145 = vector.shape_cast %144 : vector<1x1x8x8xf32> to vector<8x8xf32>
    %146 = vector.shape_cast %143 : vector<8x8xf32> to vector<1x1x8x8xf32>
    tpu.vector_store %arg6[%c0_126, %c7_127, %c0_128, %c0_129], %146 {strides = array<i32>} : memref<1x8x8x8xf32, #tpu.memory_space<vmem>>, vector<1x1x8x8xf32>,
    return
  }
  func.func @transform_0(%arg0: i32, %arg1: i32) -> (i32, i32, i32) {
    %c0_i32 = arith.constant 0 : i32
    %c0_i32_0 = arith.constant 0 : i32
    return %arg0, %arg1, %c0_i32 : i32, i32, i32
  }
  func.func @transform_1(%arg0: i32, %arg1: i32) -> (i32, i32, i32) {
    %c0_i32 = arith.constant 0 : i32
    %c0_i32_0 = arith.constant 0 : i32
    %c0_i32_1 = arith.constant 0 : i32
    %c0_i32_2 = arith.constant 0 : i32
    return %c0_i32, %c0_i32_0, %c0_i32_1 : i32, i32, i32
  }
  func.func @transform_2(%arg0: i32, %arg1: i32) -> (i32, i32, i32, i32) {
    %c0_i32 = arith.constant 0 : i32
    %c0_i32_0 = arith.constant 0 : i32
    %c0_i32_1 = arith.constant 0 : i32
    return %arg0, %c0_i32, %arg1, %c0_i32_0 : i32, i32, i32, i32
  }
  func.func @transform_3(%arg0: i32, %arg1: i32) -> (i32, i32, i32, i32) {
    %c0_i32 = arith.constant 0 : i32
    %c0_i32_0 = arith.constant 0 : i32
    %c0_i32_1 = arith.constant 0 : i32
    return %arg0, %c0_i32, %arg1, %c0_i32_0 : i32, i32, i32, i32
  }
  func.func @transform_4(%arg0: i32, %arg1: i32) -> (i32, i32, i32, i32) {
    %c0_i32 = arith.constant 0 : i32
    %c0_i32_0 = arith.constant 0 : i32
    %c0_i32_1 = arith.constant 0 : i32
    return %arg0, %c0_i32, %arg1, %c0_i32_0 : i32, i32, i32, i32
  }
}

</mosaic_0001>

<bundles_post_ra>
// kernel: tpu_custom_call.1
= control target key start
LH: loop header
LB: loop body
LE: loop exit
PB: predicated region body
PF: predicated region fallthrough
CT: control target
= control target key end

     0   :  { %s2117_s0 = inlined_call_operand.hbm [shape: f32[2,16,64], index: 0, kind: input, shape index: {}]   ;;  %s2118_s1 = inlined_call_operand.hbm [shape: f32[8,8,24], index: 1, kind: input, shape index: {}]   ;;  %s2119_s2 = inlined_call_operand.vmem [shape: f32[2,8,16,8], index: 2, kind: output, shape index: {0}]   ;;  %s2120_s3 = inlined_call_operand.vmem [shape: f32[2,8,16,8], index: 3, kind: output, shape index: {1}]   ;;  %s2121_s4 = inlined_call_operand.vmem [shape: f32[2,8,16,8], index: 4, kind: output, shape index: {2}]  }
   0x1   :  { %2127 = sst [smem:[#allocation12_spill]] %s2118_s1 }
   0x2   :  { %2128 = sst [smem:[#allocation13_spill]] %s2121_s4 }
   0x3   :  { %10 = vsyncpa [#allocation3], 0 }
   0x4   :  { %12 = vsyncpa [#allocation3 + $0x1], 0 }
   0x5   :  { %13 = vsyncpa [#allocation5], 0  ;;  %s1771_s15 = smov 0   ;;  %s1773_s16 = smov 0  }
   0x6   :  { %s1775_s17 = smov 0   ;;  %s1777_s18 = smov 0  }
   0x7   :  { %s1779_s19 = smov 0   ;;  %s1781_s20 = smov 0  }
   0x8   :  { %s1783_s21 = smov 0   ;;  %s1785_s22 = smov 0  }
   0x9 LB: > { %s1384_s23 = sadd.s32 4294967295, %s1723_s22   ;;  %p53_p0 = scmp.ne.s32.totalorder %s1699_s16, %s1695_s15  ;;  %s1723_s22 = sphi %s1785_s22, %s19_s22   ;;  %s1719_s21 = sphi %s1783_s21, %s2150_s21   ;;  %s1715_s20 = sphi %s1781_s20, %s2149_s20   ;;  %s1711_s19 = sphi %s1779_s19, %s2148_s19   ;;  %s1707_s18 = sphi %s1777_s18, %s2147_s18   ;;  %s1703_s17 = sphi %s1775_s17, %s2146_s17   ;;  %s1699_s16 = sphi %s1773_s16, %s2145_s16   ;;  %s1695_s15 = sphi %s1771_s15, %s2144_s15  }
   0xa   : > { %p1813_p1 = scmp.eq.s32.totalorder %s1384_s23, 0  ;;  %p1386_p2 = scmp.ge.s32.totalorder %s1723_s22, 1 }
   0xb   : > { %p169_p3 = scmp.lt.s32.totalorder %s1723_s22, 5  ;;  %s1725_s27 = smov [#allocation4]  }
   0xc   : > { %s2129_s24 = scalar_select %p1813_p1, 1, 0 }
   0xd   : > { %p1821_p4 = por %p1813_p1, %p53_p0  ;;  %p1825_p5 = pnand %p1386_p2, %p169_p3 }
   0xe   : > { %s181_s28 = sshll.u32 %s1725_s27, 4  ;;  %s2133_s1 = sld [smem:[#allocation12_spill]]  ;;  %s182_s28 = int_to_ptr.vmem [resolvable:$true] %s181_s28 }
   0xf   : > { %s2130_s25 = scalar_select %p1821_p4, 1, 0 }
  0x10   : > { %s2131_s26 = scalar_select %p1825_p5, 1, 0 }
  0x11   : > { %p1500_p6 = pneg %p1825_p5 }
  0x13   : > { %p1833_p7 = pnand %p1500_p6, %p1813_p1 }
  0x14   : > { %s1595_s6 = scalar_lea.hbm %s2133_s1, 1024 }
  0x15   : > { %p1596_p8 = scmp.ne.s32.totalorder %s2133_s1, %s1595_s6  ;;  %p1597_p9 = pneg %p1833_p7 }
  0x16   : > { %p1602_p12 = scmp.lt.u32.totalorder %s1595_s6, %s2133_s1 }
  0x17   : > { %p1598_p10 = pnand %p1597_p9, %p1596_p8 }
  0x19   : > { %p1599_p11 = pneg %p1598_p10 }
  0x1b   : > { %p1604_p13 = pnand %p1602_p12, %p1599_p11 }
  0x1d   : > { %1607 = shalt.err (!%p1604_p13)
}
  0x1e   : > { %s1608_s11 = scalar_lea.vmem %s182_s28, 1024  ;;  %p1616_p6 = scmp.lt.s32.totalorder %s182_s28, %s182_s28 }
  0x1f   : > { %p1609_p0 = scmp.ne.s32.totalorder %s182_s28, %s1608_s11  ;;  %p1617_p1 = scmp.lt.s32.totalorder %s1608_s11, %s1608_s11 }
  0x21   : > { %p1611_p2 = pnand %p1609_p0, %p1597_p9  ;;  %p1618_p4 = por %p1617_p1, %p1616_p6 }
  0x23   : > { %p1612_p3 = pneg %p1611_p2 }
  0x25   : > { %p1619_p5 = pnand %p1618_p4, %p1612_p3 }
  0x27   : > { %1622 = shalt.err (!%p1619_p5)
}
  0x28   : > { %s1726_s12 = smov 128   ;;  %s1727_s13 = smov 8  }
  0x29   : > { %1503 = dma.hbm_to_vmem [thread:$0]  (!%p1833_p7), %s2133_s1, 1024, %s182_s28, [#allocation5], %s1726_s12, %s1726_s12, %s1727_s13  }
  0x2a   : > { %p100_p1 = scmp.eq.s32.totalorder %s1384_s23, 3  ;;  %s28_s27 = sadd.s32 1, %s1715_s20 }
  0x2b   : > { %p29_p4 = scmp.ge.s32.totalorder %s28_s27, 2  ;;  %s31_s30 = sadd.s32 1, %s1719_s21 }
  0x2c   : > { %p47_p5 = scmp.ne.s32.totalorder %s1703_s17, %s1699_s16  ;;  %p48_p8 = scmp.eq.s32.totalorder %s1723_s22, 0 }
  0x2d   : > { %s2152_s27 = smov (%p29_p4, %s28_s27), 0  ;;  %s2154_s30 = smov (!%p29_p4, %s31_s30), %s1719_s21 }
  0x2e   : > { %2134 = sst [smem:[#allocation11_spill]] %s2152_s27  ;;  %s36_s29 = ssub.s32 %s1715_s20, %s2152_s27 }
  0x2f   : > { %s40_s5 = sadd.s32 1, %s1703_s17  ;;  %p33_p9 = scmp.ge.s32.totalorder %s2154_s30, 2 }
  0x30   : > { %p1866_p7 = por %p100_p1, %p47_p5  ;;  %p1870_p10 = por %p48_p8, %p47_p5 }
  0x31   : > { %s195_s6 = sand.u32 1, %s1703_s17   ;;  %s2156_s30 = smov (%p33_p9, %s2154_s30), 0 }
  0x32   : > { %p1509_p11 = scmp.lt.s32.totalorder %s1723_s22, 4  ;;  %s1389_s7 = sshll.u32 %s195_s6, 3 }
  0x33   : > { %s35_s8 = ssub.s32 %s1719_s21, %s2156_s30  ;;  %s1390_s10 = sshll.u32 %s1719_s21, 1 }
  0x34   : > { %s37_s9 = sor.u32 %s36_s29, %s35_s8  ;;  %s204_s11 = sadd.s32 %s1715_s20, %s1390_s10 }
  0x35   : > { %p38_p12 = scmp.eq.s32.totalorder %s37_s9, 0  ;;  %s1391_s12 = sshll.u32 %s204_s11, 7 }
  0x36   : > { %s199_s13 = scalar_lea.vmem [#allocation2], %s1389_s7  ;;  %s1888_s4 = scalar_lea.hbm %s2117_s0, %s1391_s12 }
  0x37   : > { %s208_s14 = sshll.u32 %s199_s13, 4  ;;  %p1896_p13 = pnand %p1509_p11, %p1870_p10  ;;  %s1890_s14 = int_to_ptr.vmem [resolvable:$true] %s208_s14 }
  0x38   : > { %s1883_s15 = scalar_select %p38_p12, %s1703_s17, %s40_s5  }
  0x39   : > { %s196_s5 = scalar_lea.sflag [#allocation3], %s195_s6  ;;  %s1623_s7 = scalar_lea.hbm %s1888_s4, 128 }
  0x3a   : > { %p1624_p0 = scmp.ne.s32.totalorder %s1888_s4, %s1623_s7  ;;  %p1625_p2 = pneg %p1896_p13 }
  0x3b   : > { %s1628_s23 = scalar_lea.hbm %s2117_s0, 512  ;;  %p1629_p1 = scmp.lt.u32.totalorder %s1888_s4, %s2117_s0 }
  0x3c   : > { %p1626_p3 = pnand %p1625_p2, %p1624_p0  ;;  %p1630_p4 = scmp.lt.u32.totalorder %s1628_s23, %s1623_s7 }
  0x3d   : > { %p1632_p8 = scmp.lt.u32.totalorder %s1623_s7, %s1888_s4 }
  0x3e   : > { %p1627_p6 = pneg %p1626_p3  ;;  %p1631_p5 = por %p1630_p4, %p1629_p1 }
  0x40   : > { %p1633_p9 = por %p1632_p8, %p1631_p5 }
  0x42   : > { %p1634_p10 = pnand %p1633_p9, %p1627_p6 }
  0x44   : > { %1637 = shalt.err (!%p1634_p10)
}
  0x45   : > { %s1638_s6 = scalar_lea.vmem %s1890_s14, 128  ;;  %s1728_s10 = smov [#allocation2]  }
  0x46   : > { %p1639_p11 = scmp.ne.s32.totalorder %s1890_s14, %s1638_s6  ;;  %s1643_s11 = sshll.u32 %s1728_s10, 4  ;;  %s1644_s11 = int_to_ptr.vmem [resolvable:$false] %s1643_s11 }
  0x47   : > { %s1645_s12 = scalar_lea.vmem %s1644_s11, 256  ;;  %p1646_p3 = scmp.lt.s32.totalorder %s1890_s14, %s1644_s11 }
  0x48   : > { %p1641_p12 = pnand %p1639_p11, %p1625_p2  ;;  %p1647_p1 = scmp.lt.s32.totalorder %s1645_s12, %s1638_s6 }
  0x4a   : > { %p1642_p0 = pneg %p1641_p12  ;;  %p1648_p4 = por %p1647_p1, %p1646_p3 }
  0x4c   : > { %p1649_p5 = pnand %p1648_p4, %p1642_p0 }
  0x4e   : > { %1652 = shalt.err (!%p1649_p5)
}
  0x4f   : > { %1507 = dma.hbm_to_vmem [thread:$0]  (!%p1896_p13), %s1888_s4, 128, %s1890_s14, %s196_s5  }
  0x50   : > { %p2138_p6 = scmp.ne.s32.totalorder %s2131_s26, 0 }
  0x51   : > { %s1928_s13 = sand.u32 (!%p2138_p6), 1, %s1699_s16   ;;  %p2139_p2 = scmp.ne.s32.totalorder (!%p2138_p6), %s2130_s25, 0 }
  0x52   : > { %217 = sbr.rel (%p2138_p6) target bundleno = 724 (0x2d4), region = 28  ;;  %s1393_s7 = sshll.u32 (!%p2138_p6), %s1928_s13, 3 }
  0x53   : > { %s220_s1 = scalar_lea.sflag (!%p2138_p6), [#allocation3], %s1928_s13  ;;  %s223_s27 = scalar_lea.vmem (!%p2138_p6), [#allocation2], %s1393_s7 }
  0x59   : > { %1686 = dma.done.wait (%p2139_p2), %s220_s1, 128  }
  0x5a   : > { %1688 = vsyncadd (%p2139_p2), %s220_s1, 4294967168  ;;  %p2140_p8 = scmp.ne.s32.totalorder %s2129_s24, 0 }
  0x5c   : > { %1690 = dma.done.wait (%p2140_p8), [#allocation5], 1024  }
  0x5d   : > { %1692 = vsyncadd (%p2140_p8), [#allocation5], 4294966272  ;;  %v1729_v0 = vmov 0.0   ;;  %vm1730_vm0 = vmmov 0   ;;  %v259_v1 = vld [vmem:[%s223_s27] sm:$0xff]  ;;  %v260_v2 = vld [vmem:[#allocation4] sm:$0xff] }
  0x5e   : > { %1454 = vmatprep.subr.mxu0 %v1729_v0  ;;  %1456 = vmatprep.mubr.msk.f32.mxu0 %vm1730_vm0, %v1729_v0  ;;  %v336_v3 = vld [vmem:[#allocation4 + $0x8] sm:$0xff]  ;;  %vm261_vm1 = vcmask 64512   ;;  %s1731_s4 = smov 120   ;;  %s1732_s25 = smov 104   ;;  %v412_v4 = vld [vmem:[#allocation4 + $0x10] sm:$0xff]  ;;  %v488_v5 = vld [vmem:[#allocation4 + $0x18] sm:$0xff] }
  0x5f   : > { %1459 = vmatprep.subr.mxu1 %v1729_v0  ;;  %1461 = vmatprep.mubr.msk.f32.mxu1 %vm1730_vm0, %v1729_v0  ;;  %s1733_s24 = smov 112   ;;  %s1734_s26 = smov 96   ;;  %v564_v8 = vld [vmem:[#allocation4 + $0x20] sm:$0xff]  ;;  %v640_v9 = vld [vmem:[#allocation4 + $0x28] sm:$0xff]  ;;  %v716_v12 = vld [vmem:[#allocation4 + $0x30] sm:$0xff]  ;;  %vm895_vm2 = vcmask 195584  }
  0x60   : > { %337 = vrot.lane.b32.xlu0 %v259_v1, %s1731_s4  ;;  %489 = vrot.lane.b32.xlu1 %v259_v1, %s1732_s25  ;;  %s1735_s14 = smov 88   ;;  %s1736_s29 = smov 80   ;;  %v792_v14 = vld [vmem:[#allocation4 + $0x38] sm:$0xff]  ;;  %vm897_vm3 = vcmask 392192   ;;  %vm899_vm4 = vcmask 588800   ;;  %vm901_vm5 = vcmask 785408  }
  0x61   : > { %1455 = vmatpush3.msra.mxu0 %v260_v2  ;;  %1460 = vmatpush3.msra.mxu1 %v336_v3  ;;  %s1737_s5 = smov 72   ;;  %s1738_s23 = smov 24   ;;  %vm903_vm6 = vcmask 982016   ;;  %vm905_vm7 = vcmask 130048   ;;  %vm907_vm8 = vcmask 326656  }
  0x62   : > { %1464 = vmatprep.subr.mxu0 %v1729_v0  ;;  %1457 = vmatmul.mubr.msk.f32.vlgmr.msra.gmra.mrb[0].mxu0 %vm261_vm1, %v259_v1  ;;  %s1739_s8 = smov 48   ;;  %s1740_s9 = smov 16  }
  0x63   : > { %1465 = vmatpush3.msra.mxu0 %v412_v4  ;;  %1469 = vmatprep.subr.mxu1 %v1729_v0  ;;  %s1741_s6 = smov 40   ;;  %s1971_s10 = sshll.u32 %s1928_s13, 6 }
  0x64   : > { %413 = vrot.lane.b32.xlu0 %v259_v1, %s1733_s24  ;;  %565 = vrot.lane.b32.xlu1 %v259_v1, %s1734_s26  ;;  %s1742_s11 = smov 64   ;;  %s1975_s12 = scalar_lea.vmem [#allocation6], %s1971_s10 }
  0x65   : > { %1466 = vmatprep.mubr.msk.f32.mxu0 %vm1730_vm0, %v1729_v0  ;;  %1474 = vmatprep.subr.mxu0 %v1729_v0  ;;  %s1980_s13 = scalar_lea.vmem [#allocation8], %s1971_s10  ;;  %s1743_s7 = smov 32  }
  0x66   : > { %s1744_s1 = smov 56   ;;  %s1745_s27 = smov 8  }
  0x68   : > { %641 = vrot.lane.b32.xlu0 %v259_v1, %s1735_s14  ;;  %717 = vrot.lane.b32.xlu1 %v259_v1, %s1736_s29 }
  0x6c   : > { %793 = vrot.lane.b32.xlu0 %v259_v1, %s1737_s5 }
  0xd2   : > { %v338_v6 = vpop.permute.xlu0 %337  ;;  %v490_v7 = vpop.permute.xlu1 %489 }
  0xd3   : > { %1462 = vmatmul.mubr.msk.f32.vlgmr.msra.gmra.mrb[0].mxu1 %vm261_vm1, %v338_v6 }
  0xd4   : > { %1470 = vmatpush3.msra.mxu1 %v488_v5  ;;  %1471 = vmatprep.mubr.msk.f32.mxu1 %vm1730_vm0, %v1729_v0 }
  0xd5   : > { %1479 = vmatprep.subr.mxu1 %v1729_v0 }
  0xd6   : > { %v414_v10 = vpop.permute.xlu0 %413  ;;  %v566_v11 = vpop.permute.xlu1 %565 }
  0xd7   : > { %1467 = vmatmul.mubr.msk.f32.vlgmr.msra.gmra.mrb[2].mxu0 %vm261_vm1, %v414_v10  ;;  %1472 = vmatmul.mubr.msk.f32.vlgmr.msra.gmra.mrb[2].mxu1 %vm261_vm1, %v490_v7 }
  0xd8   : > { %1475 = vmatpush3.msra.mxu0 %v564_v8  ;;  %1480 = vmatpush3.msra.mxu1 %v640_v9 }
  0xd9   : > { %1481 = vmatprep.mubr.msk.f32.mxu1 %vm1730_vm0, %v1729_v0  ;;  %1476 = vmatprep.mubr.msk.f32.mxu0 %vm1730_vm0, %v1729_v0 }
  0xda   : > { %v642_v13 = vpop.permute.xlu0 %641  ;;  %1484 = vmatprep.subr.mxu0 %v1729_v0  ;;  %1489 = vmatprep.subr.mxu1 %v1729_v0  ;;  %v718_v15 = vpop.permute.xlu1 %717 }
  0xdb   : > { %1477 = vmatmul.mubr.msk.f32.vlgmr.msra.gmra.mrb[4].mxu0 %vm261_vm1, %v566_v11  ;;  %1482 = vmatmul.mubr.msk.f32.vlgmr.msra.gmra.mrb[4].mxu1 %vm261_vm1, %v642_v13 }
  0xdc   : > { %1485 = vmatpush3.msra.mxu0 %v716_v12  ;;  %1486 = vmatprep.mubr.msk.f32.mxu0 %vm1730_vm0, %v1729_v0 }
  0xdd   : > { %1490 = vmatpush3.msra.mxu1 %v792_v14  ;;  %1491 = vmatprep.mubr.msk.f32.mxu1 %vm1730_vm0, %v1729_v0 }
  0xde   : > { %v794_v16 = vpop.permute.xlu0 %793 }
  0xdf   : > { %1487 = vmatmul.mubr.msk.f32.vlgmr.msra.gmra.mrb[6].mxu0 %vm261_vm1, %v718_v15  ;;  %1492 = vmatmul.mubr.msk.f32.vlgmr.msra.gmra.mrb[6].mxu1 %vm261_vm1, %v794_v16 }
 0x135   : > { %v331_v17 = vpop.f32.mrb[0].mxu0 }
 0x136   : > { %v1458_v18 = vpop.f32.mrb[1].mxu0 }
 0x1a6   : > { %v407_v19 = vpop.f32.mrb[0].mxu1 }
 0x1a7   : > { %868 = vrot.lane.b32.xlu1 %v407_v19, %s1738_s23  ;;  %v1463_v20 = vpop.f32.mrb[1].mxu1 }
 0x1aa   : > { %v483_v21 = vpop.f32.mrb[2].mxu0  ;;  %v559_v22 = vpop.f32.mrb[2].mxu1 }
 0x1ab   : > { %876 = vrot.lane.b32.xlu1 %v559_v22, %s1737_s5  ;;  %v1473_v23 = vpop.f32.mrb[3].mxu1  ;;  %872 = vrot.lane.b32.xlu0 %v483_v21, %s1739_s8  ;;  %v1468_v24 = vpop.f32.mrb[3].mxu0 }
 0x1ae   : > { %v635_v25 = vpop.f32.mrb[4].mxu0  ;;  %v711_v26 = vpop.f32.mrb[4].mxu1 }
 0x1af   : > { %v1483_v27 = vpop.f32.mrb[5].mxu1  ;;  %880 = vrot.lane.b32.xlu0 %v635_v25, %s1734_s26  ;;  %v1478_v28 = vpop.f32.mrb[5].mxu0  ;;  %884 = vrot.lane.b32.xlu1 %v711_v26, %s1731_s4 }
 0x1b2   : > { %v787_v29 = vpop.f32.mrb[6].mxu0  ;;  %v863_v30 = vpop.f32.mrb[6].mxu1 }
 0x1b3   : > { %888 = vrot.lane.b32.xlu0 %v787_v29, %s1740_s9  ;;  %892 = vrot.lane.b32.xlu1 %v863_v30, %s1741_s6  ;;  %v1488_v31 = vpop.f32.mrb[7].mxu0  ;;  %v1493_v32 = vpop.f32.mrb[7].mxu1 }
 0x219   : > { %v869_v33 = vpop.permute.xlu1 %868 }
 0x21a   : > { %v896_v34 = vsel %vm895_vm2, %v331_v17, %v869_v33 }
 0x21d   : > { %v877_v35 = vpop.permute.xlu1 %876  ;;  %v873_v36 = vpop.permute.xlu0 %872 }
 0x21e   : > { %v898_v37 = vsel %vm897_vm3, %v896_v34, %v873_v36 }
 0x21f   : > { %v900_v38 = vsel %vm899_vm4, %v898_v37, %v877_v35 }
 0x221   : > { %v881_v39 = vpop.permute.xlu0 %880  ;;  %v885_v40 = vpop.permute.xlu1 %884 }
 0x222   : > { %v902_v41 = vsel %vm901_vm5, %v900_v38, %v881_v39 }
 0x223   : > { %v904_v42 = vsel %vm903_vm6, %v902_v41, %v885_v40 }
 0x224   : > { %v909_v43 = vmul.f32 0.35355338, %v904_v42  ;;  %939 = vrot.lane.b32.xlu1 %v904_v42, %s1739_s8  ;;  %912 = vrot.lane.b32.xlu0 %v904_v42, %s1742_s11 }
 0x225   : > { %v889_v44 = vpop.permute.xlu0 %888  ;;  %v893_v45 = vpop.permute.xlu1 %892 }
 0x226   : > { %v906_v46 = vsel %vm905_vm7, %v885_v40, %v889_v44  ;;  %910 = vst.msk [vmem:[%s1975_s12] sm:$0xff] %vm261_vm1, %v909_v43 }
 0x227   : > { %v908_v47 = vsel %vm907_vm8, %v906_v46, %v893_v45 }
 0x228   : > { %916 = vst.msk [vmem:[%s1980_s13] sm:$0xff] %vm261_vm1, %v908_v47  ;;  %969 = vrot.lane.b32.xlu1 %v904_v42, %s1743_s7  ;;  %923 = vrot.lane.b32.xlu0 %v904_v42, %s1744_s1 }
 0x22c   : > { %999 = vrot.lane.b32.xlu1 %v904_v42, %s1740_s9  ;;  %954 = vrot.lane.b32.xlu0 %v904_v42, %s1741_s6 }
 0x22d   : > { %v1084_v6 = vld [vmem:[%s1975_s12] sm:$0xff] (%p1866_p7) }
 0x230   : > { %918 = vrot.lane.b32.xlu1 %v909_v43, %s1731_s4  ;;  %984 = vrot.lane.b32.xlu0 %v904_v42, %s1738_s23  ;;  %s2002_s23 = scalar_lea.vmem [#allocation7], %s1971_s10 }
 0x234   : > { %949 = vrot.lane.b32.xlu1 %v909_v43, %s1732_s25  ;;  %934 = vrot.lane.b32.xlu0 %v909_v43, %s1733_s24 }
 0x238   : > { %979 = vrot.lane.b32.xlu1 %v909_v43, %s1735_s14  ;;  %964 = vrot.lane.b32.xlu0 %v909_v43, %s1734_s26 }
 0x23c   : > { %1009 = vrot.lane.b32.xlu1 %v909_v43, %s1737_s5  ;;  %994 = vrot.lane.b32.xlu0 %v909_v43, %s1736_s29 }
 0x240   : > { %944 = vrot.lane.b32.xlu0 %v908_v47, %s1733_s24  ;;  %929 = vrot.lane.b32.xlu1 %v908_v47, %s1731_s4  ;;  %s1430_s4 = sshll.u32 (%p1866_p7), %s1711_s19, 4 }
 0x244   : > { %974 = vrot.lane.b32.xlu0 %v908_v47, %s1734_s26  ;;  %959 = vrot.lane.b32.xlu1 %v908_v47, %s1732_s25  ;;  %s1040_s25 = sadd.s32 (%p1866_p7), %s1707_s18, %s1430_s4 }
 0x245   : > { %s1431_s24 = sshll.u32 (%p1866_p7), %s1040_s25, 3 }
 0x248   : > { %1004 = vrot.lane.b32.xlu0 %v908_v47, %s1736_s29  ;;  %989 = vrot.lane.b32.xlu1 %v908_v47, %s1735_s14  ;;  %s1042_s29 = scalar_lea.vmem (%p1866_p7), %s2119_s2, %s1431_s24 }
 0x249   : > { %1085 = vst [vmem:[%s1042_s29] sm:$0xff] (%p1866_p7), %v1084_v6 }
 0x24c   : > { %1014 = vrot.lane.b32.xlu0 %v904_v42, %s1745_s27  ;;  %1019 = vrot.lane.b32.xlu1 %v908_v47, %s1737_s5 }
 0x296   : > { %v940_v48 = vpop.permute.xlu1 %939  ;;  %v913_v49 = vpop.permute.xlu0 %912 }
 0x297   : > { %1410 = vst.msk [vmem:[%s2002_s23 + $0x10] sm:$0xff] %vm261_vm1, %v940_v48  ;;  %915 = vst.msk [vmem:[%s2002_s23] sm:$0xff] %vm261_vm1, %v913_v49 }
 0x29a   : > { %v970_v50 = vpop.permute.xlu1 %969  ;;  %v924_v51 = vpop.permute.xlu0 %923 }
 0x29b   : > { %1416 = vst.msk [vmem:[%s2002_s23 + $0x20] sm:$0xff] %vm261_vm1, %v970_v50  ;;  %1407 = vst.msk [vmem:[%s2002_s23 + $0x8] sm:$0xff] %vm261_vm1, %v924_v51 }
 0x29e   : > { %v1000_v52 = vpop.permute.xlu1 %999  ;;  %v955_v53 = vpop.permute.xlu0 %954 }
 0x29f   : > { %1422 = vst.msk [vmem:[%s2002_s23 + $0x30] sm:$0xff] %vm261_vm1, %v1000_v52  ;;  %1413 = vst.msk [vmem:[%s2002_s23 + $0x18] sm:$0xff] %vm261_vm1, %v955_v53 }
 0x2a2   : > { %v919_v54 = vpop.permute.xlu1 %918  ;;  %v985_v55 = vpop.permute.xlu0 %984 }
 0x2a3   : > { %1406 = vst.msk [vmem:[%s1975_s12 + $0x8] sm:$0xff] %vm261_vm1, %v919_v54  ;;  %1419 = vst.msk [vmem:[%s2002_s23 + $0x28] sm:$0xff] %vm261_vm1, %v985_v55 }
 0x2a6   : > { %v950_v56 = vpop.permute.xlu1 %949  ;;  %v935_v57 = vpop.permute.xlu0 %934 }
 0x2a7   : > { %1412 = vst.msk [vmem:[%s1975_s12 + $0x18] sm:$0xff] %vm261_vm1, %v950_v56  ;;  %1409 = vst.msk [vmem:[%s1975_s12 + $0x10] sm:$0xff] %vm261_vm1, %v935_v57 }
 0x2aa   : > { %v980_v58 = vpop.permute.xlu1 %979  ;;  %v965_v59 = vpop.permute.xlu0 %964  ;;  %v1086_v7 = vld [vmem:[%s1975_s12 + $0x8] sm:$0xff] (%p1866_p7) }
 0x2ab   : > { %1418 = vst.msk [vmem:[%s1975_s12 + $0x28] sm:$0xff] %vm261_vm1, %v980_v58  ;;  %1415 = vst.msk [vmem:[%s1975_s12 + $0x20] sm:$0xff] %vm261_vm1, %v965_v59 }
 0x2ac   : > { %1087 = vst [vmem:[%s1042_s29 + $0x10] sm:$0xff] (%p1866_p7), %v1086_v7 }
 0x2ae   : > { %v1010_v60 = vpop.permute.xlu1 %1009  ;;  %v995_v61 = vpop.permute.xlu0 %994  ;;  %v1088_v8 = vld [vmem:[%s1975_s12 + $0x10] sm:$0xff] (%p1866_p7)  ;;  %v1090_v9 = vld [vmem:[%s1975_s12 + $0x18] sm:$0xff] (%p1866_p7) }
 0x2af   : > { %1424 = vst.msk [vmem:[%s1975_s12 + $0x38] sm:$0xff] %vm261_vm1, %v1010_v60  ;;  %1421 = vst.msk [vmem:[%s1975_s12 + $0x30] sm:$0xff] %vm261_vm1, %v995_v61 }
 0x2b0   : > { %1089 = vst [vmem:[%s1042_s29 + $0x20] sm:$0xff] (%p1866_p7), %v1088_v8  ;;  %1091 = vst [vmem:[%s1042_s29 + $0x30] sm:$0xff] (%p1866_p7), %v1090_v9 }
 0x2b2   : > { %v930_v62 = vpop.permute.xlu1 %929  ;;  %v945_v63 = vpop.permute.xlu0 %944  ;;  %v1092_v10 = vld [vmem:[%s1975_s12 + $0x20] sm:$0xff] (%p1866_p7)  ;;  %v1094_v11 = vld [vmem:[%s1975_s12 + $0x28] sm:$0xff] (%p1866_p7) }
 0x2b3   : > { %1408 = vst.msk [vmem:[%s1980_s13 + $0x8] sm:$0xff] %vm261_vm1, %v930_v62  ;;  %1411 = vst.msk [vmem:[%s1980_s13 + $0x10] sm:$0xff] %vm261_vm1, %v945_v63 }
 0x2b4   : > { %1093 = vst [vmem:[%s1042_s29 + $0x40] sm:$0xff] (%p1866_p7), %v1092_v10  ;;  %1095 = vst [vmem:[%s1042_s29 + $0x50] sm:$0xff] (%p1866_p7), %v1094_v11 }
 0x2b6   : > { %v960_v0 = vpop.permute.xlu1 %959  ;;  %v975_v1 = vpop.permute.xlu0 %974  ;;  %v1096_v12 = vld [vmem:[%s1975_s12 + $0x30] sm:$0xff] (%p1866_p7)  ;;  %v1098_v13 = vld [vmem:[%s1975_s12 + $0x38] sm:$0xff] (%p1866_p7) }
 0x2b7   : > { %1414 = vst.msk [vmem:[%s1980_s13 + $0x18] sm:$0xff] %vm261_vm1, %v960_v0  ;;  %1417 = vst.msk [vmem:[%s1980_s13 + $0x20] sm:$0xff] %vm261_vm1, %v975_v1 }
 0x2b8   : > { %1097 = vst [vmem:[%s1042_s29 + $0x60] sm:$0xff] (%p1866_p7), %v1096_v12  ;;  %1099 = vst [vmem:[%s1042_s29 + $0x70] sm:$0xff] (%p1866_p7), %v1098_v13 }
 0x2b9   : > { %1038 = sbr.rel (!%p1866_p7) target bundleno = 704 (0x2c0), region = 40 }
 0x2ba   : > { %v990_v2 = vpop.permute.xlu1 %989  ;;  %v1005_v3 = vpop.permute.xlu0 %1004 }
 0x2bb   : > { %1420 = vst.msk [vmem:[%s1980_s13 + $0x28] sm:$0xff] %vm261_vm1, %v990_v2  ;;  %1423 = vst.msk [vmem:[%s1980_s13 + $0x30] sm:$0xff] %vm261_vm1, %v1005_v3 }
 0x2be   : > { %v1020_v4 = vpop.permute.xlu1 %1019  ;;  %v1015_v5 = vpop.permute.xlu0 %1014 }
 0x2bf   : > { %1426 = vst.msk [vmem:[%s1980_s13 + $0x38] sm:$0xff] %vm261_vm1, %v1020_v4  ;;  %1425 = vst.msk [vmem:[%s2002_s23 + $0x38] sm:$0xff] %vm261_vm1, %v1015_v5 }
 0x2c0 PF: > { %1105 = sbr.rel (!%p1866_p7) target bundleno = 712 (0x2c8), region = 78  ;;  %s1432_s5 = sshll.u32 (%p1866_p7), %s1711_s19, 4  ;;  %v1151_v14 = vld [vmem:[%s2002_s23] sm:$0xff] (%p1866_p7)  ;;  %v1153_v15 = vld [vmem:[%s2002_s23 + $0x8] sm:$0xff] (%p1866_p7)  ;;  %v1155_v16 = vld [vmem:[%s2002_s23 + $0x10] sm:$0xff] (%p1866_p7) }
 0x2c1   : > { %s1107_s8 = sadd.s32 (%p1866_p7), %s1707_s18, %s1432_s5  ;;  %v1157_v17 = vld [vmem:[%s2002_s23 + $0x18] sm:$0xff] (%p1866_p7)  ;;  %v1159_v18 = vld [vmem:[%s2002_s23 + $0x20] sm:$0xff] (%p1866_p7)  ;;  %v1161_v19 = vld [vmem:[%s2002_s23 + $0x28] sm:$0xff] (%p1866_p7) }
 0x2c2   : > { %s1433_s9 = sshll.u32 (%p1866_p7), %s1107_s8, 3  ;;  %v1163_v20 = vld [vmem:[%s2002_s23 + $0x30] sm:$0xff] (%p1866_p7) }
 0x2c3   : > { %s1109_s11 = scalar_lea.vmem (%p1866_p7), %s2120_s3, %s1433_s9 }
 0x2c4   : > { %1152 = vst [vmem:[%s1109_s11] sm:$0xff] (%p1866_p7), %v1151_v14  ;;  %1154 = vst [vmem:[%s1109_s11 + $0x10] sm:$0xff] (%p1866_p7), %v1153_v15 }
 0x2c5   : > { %1156 = vst [vmem:[%s1109_s11 + $0x20] sm:$0xff] (%p1866_p7), %v1155_v16  ;;  %1158 = vst [vmem:[%s1109_s11 + $0x30] sm:$0xff] (%p1866_p7), %v1157_v17 }
 0x2c6   : > { %v1165_v21 = vld [vmem:[%s2002_s23 + $0x38] sm:$0xff] (%p1866_p7)  ;;  %1160 = vst [vmem:[%s1109_s11 + $0x40] sm:$0xff] (%p1866_p7), %v1159_v18  ;;  %1162 = vst [vmem:[%s1109_s11 + $0x50] sm:$0xff] (%p1866_p7), %v1161_v19 }
 0x2c7   : > { %1164 = vst [vmem:[%s1109_s11 + $0x60] sm:$0xff] %v1163_v20  ;;  %1166 = vst [vmem:[%s1109_s11 + $0x70] sm:$0xff] %v1165_v21 }
 0x2c8 PF: > { %1172 = sbr.rel (!%p1866_p7) target bundleno = 724 (0x2d4), region = 116  ;;  %s1434_s12 = sshll.u32 (%p1866_p7), %s1711_s19, 4  ;;  %v1218_v22 = vld [vmem:[%s1980_s13] sm:$0xff] (%p1866_p7)  ;;  %v1220_v23 = vld [vmem:[%s1980_s13 + $0x8] sm:$0xff] (%p1866_p7)  ;;  %v1222_v24 = vld [vmem:[%s1980_s13 + $0x10] sm:$0xff] (%p1866_p7) }
 0x2c9   : > { %s1174_s7 = sadd.s32 (%p1866_p7), %s1707_s18, %s1434_s12  ;;  %v1224_v25 = vld [vmem:[%s1980_s13 + $0x18] sm:$0xff] (%p1866_p7)  ;;  %v1226_v26 = vld [vmem:[%s1980_s13 + $0x20] sm:$0xff] (%p1866_p7)  ;;  %v1228_v27 = vld [vmem:[%s1980_s13 + $0x28] sm:$0xff] (%p1866_p7)  ;;  %s2141_s23 = sld [smem:[#allocation13_spill]] (%p1866_p7) }
 0x2ca   : > { %s1435_s28 = sshll.u32 (%p1866_p7), %s1174_s7, 3  ;;  %v1230_v28 = vld [vmem:[%s1980_s13 + $0x30] sm:$0xff] (%p1866_p7)  ;;  %v1232_v29 = vld [vmem:[%s1980_s13 + $0x38] sm:$0xff] (%p1866_p7) }
 0x2cf   : > { %s1176_s4 = scalar_lea.vmem %s2141_s23, %s1435_s28 }
 0x2d0   : > { %1219 = vst [vmem:[%s1176_s4] sm:$0xff] %v1218_v22  ;;  %1221 = vst [vmem:[%s1176_s4 + $0x10] sm:$0xff] %v1220_v23 }
 0x2d1   : > { %1223 = vst [vmem:[%s1176_s4 + $0x20] sm:$0xff] %v1222_v24  ;;  %1225 = vst [vmem:[%s1176_s4 + $0x30] sm:$0xff] %v1224_v25 }
 0x2d2   : > { %1227 = vst [vmem:[%s1176_s4 + $0x40] sm:$0xff] %v1226_v26  ;;  %1229 = vst [vmem:[%s1176_s4 + $0x50] sm:$0xff] %v1228_v27 }
 0x2d3   : > { %1231 = vst [vmem:[%s1176_s4 + $0x60] sm:$0xff] %v1230_v28  ;;  %1233 = vst [vmem:[%s1176_s4 + $0x70] sm:$0xff] %v1232_v29 }
 0x2d4 PF: > { %s19_s22 = sadd.s32 1, %s1723_s22   ;;  %s2142_s18 = smov %s1883_s15 }
 0x2d5   : > { %p16_p7 = scmp.ge.s32.totalorder %s19_s22, 6   ;;  %s2143_s13 = sld [smem:[#allocation11_spill]] }
 0x2d6   : > { %s2144_s15 = smov %s1699_s16  ;;  %s2145_s16 = smov %s1703_s17 }
 0x2d7   : > { %s2146_s17 = smov %s2142_s18  ;;  %s2147_s18 = smov %s1715_s20 }
 0x2d8   : > { %s2148_s19 = smov %s1719_s21  ;;  %s2150_s21 = smov %s2156_s30 }
 0x2d9   :  { %18 = sbr.rel (!%p16_p7) target bundleno = 9 (0x9), region = 238 }
 0x2db   : > { %s2149_s20 = smov %s2143_s13 }
 0x2e0   :  { %1263 = vsyncpa [#allocation3], 1 }
 0x2e1   :  { %1265 = vsyncpa [#allocation3 + $0x1], 1 }
 0x2e2   :  { %1266 = vsyncpa [#allocation5], 1 }

</bundles_post_ra>
